<compile_context>
chip_gen: v6e
topology: v6e:2x2x1
jax: 0.10.0
libtpu: 0.0.40
codegen_flags: <defaults>
</compile_context>

<pallas_src>
import math

import jax
import jax.numpy as jnp
from jax.experimental import pallas as pl
from jax.experimental.pallas import tpu as pltpu

EPS = 1e-5  # PyTorch BatchNorm2d default eps


def round_up(x, m):
    return (x + m - 1) // m * m


def pick_spatial_tile(pp, n_batch, cap=2048):
    """Lane tile: divides pp, multiple of 128, and leaves >=4 grid steps if possible."""
    tp = min(pp, cap)
    while pp % tp:
        tp -= 128
    while n_batch * (pp // tp) < 4 and tp > 128 and tp % 256 == 0:
        tp //= 2
    return tp


# --------------------------------------------------------------------------
# Kernel 1: per-tile BN statistics of both (bias-free) 1x1 conv branches.
# --------------------------------------------------------------------------
def _conv_stats_kernel(g_ref, x_ref, wg_ref, wx_ref, s_ref):
    fi = wg_ref.shape[0]
    lanes = s_ref.shape[-1]
    ug = jnp.dot(wg_ref[...], g_ref[0], preferred_element_type=jnp.float32)
    ux = jnp.dot(wx_ref[...], x_ref[0], preferred_element_type=jnp.float32)

    def lane_bcast(v):  # (fi, 1) -> (fi, lanes)
        return jnp.broadcast_to(v, (fi, lanes))

    # Padded spatial lanes / padded channels are exact zeros -> contribute 0.
    s_ref[0] = jnp.concatenate(
        [lane_bcast(jnp.sum(ug, axis=1, keepdims=True)),
         lane_bcast(jnp.sum(ug * ug, axis=1, keepdims=True)),
         lane_bcast(jnp.sum(ux, axis=1, keepdims=True)),
         lane_bcast(jnp.sum(ux * ux, axis=1, keepdims=True))],
        axis=0)


# --------------------------------------------------------------------------
# Kernel 2: recompute convs with BN folded in -> relu -> psi 1x1 conv -> z.
# --------------------------------------------------------------------------
def _gate_logits_kernel(g_ref, x_ref, ag_ref, ax_ref, prm_ref, z_ref):
    fi = ag_ref.shape[0]
    s = jnp.dot(ag_ref[...], g_ref[0], preferred_element_type=jnp.float32)
    s = s + jnp.dot(ax_ref[...], x_ref[0], preferred_element_type=jnp.float32)
    prm = prm_ref[...]
    s = jnp.maximum(s + prm[0:fi, :], 0.0)                       # relu(BN(yg)+BN(yx))
    z = jnp.sum(s * prm[fi:2 * fi, :], axis=0, keepdims=True)    # psi 1x1 conv -> (1, TP)
    z_ref[0] = jnp.broadcast_to(z, z_ref.shape[1:])


# --------------------------------------------------------------------------
# Kernel 3: out = x * sigmoid(BN(z))   (psi broadcast over channels in-kernel)
# --------------------------------------------------------------------------
def _apply_gate_kernel(x_ref, z_ref, zp_ref, o_ref):
    zp = zp_ref[...]
    z = z_ref[0][0:1, :]                                         # (1, TP)
    psi = jax.nn.sigmoid((z - zp[0:1, :]) * zp[1:2, :])
    o_ref[0] = x_ref[0].astype(jnp.float32) * psi


# --------------------------------------------------------------------------
# AttentionBlock forward (NCHW in, NCHW out - matches the PyTorch reference)
# --------------------------------------------------------------------------
def attention_block(g_nchw, x_nchw, params):
    N, Fg, H, W = g_nchw.shape
    _, Fl, _, _ = x_nchw.shape
    Fint = params["Wg_w"].shape[0]

    P = H * W
    M = N * P                                   # real positions for BN stats
    Pp = round_up(P, 128)
    TP = pick_spatial_tile(Pp, N)
    Pt = Pp // TP
    Fgp = round_up(Fg, 16)
    Flp = round_up(Fl, 16)
    Fip = round_up(Fint, 16)

    cp = pltpu.CompilerParams(dimension_semantics=("parallel", "parallel"))

    # Channel-major, padded ONCE, built directly in bf16 (cast fused into pad).
    g3 = jnp.zeros((N, Fgp, Pp), jnp.bfloat16)
    g3 = g3.at[:, :Fg, :P].set(g_nchw.reshape(N, Fg, P).astype(jnp.bfloat16))
    x3 = jnp.zeros((N, Flp, Pp), jnp.bfloat16)
    x3 = x3.at[:, :Fl, :P].set(x_nchw.reshape(N, Fl, P).astype(jnp.bfloat16))

    wg_oi = params["Wg_w"].reshape(Fint, Fg).astype(jnp.float32)
    wx_oi = params["Wx_w"].reshape(Fint, Fl).astype(jnp.float32)
    wg = jnp.zeros((Fip, Fgp), jnp.bfloat16).at[:Fint, :Fg].set(wg_oi.astype(jnp.bfloat16))
    wx = jnp.zeros((Fip, Flp), jnp.bfloat16).at[:Fint, :Fl].set(wx_oi.astype(jnp.bfloat16))

    # ---- pass 1: BN batch statistics of W_g(g) and W_x(x) -------------------
    stats = pl.pallas_call(
        _conv_stats_kernel,
        out_shape=jax.ShapeDtypeStruct((N * Pt, 4 * Fip, 128), jnp.float32),
        grid=(N, Pt),
        in_specs=[
            pl.BlockSpec((1, Fgp, TP), lambda n, p: (n, 0, p)),
            pl.BlockSpec((1, Flp, TP), lambda n, p: (n, 0, p)),
            pl.BlockSpec((Fip, Fgp), lambda n, p: (0, 0)),
            pl.BlockSpec((Fip, Flp), lambda n, p: (0, 0)),
        ],
        out_specs=pl.BlockSpec((1, 4 * Fip, 128), lambda n, p: (n * Pt + p, 0, 0)),
        compiler_params=cp,
    )(g3, x3, wg, wx)

    st = stats[:, :, 0].sum(axis=0)                     # (4*Fip,)
    sum_ug = st[0 * Fip:0 * Fip + Fint]
    sq_ug = st[1 * Fip:1 * Fip + Fint]
    sum_ux = st[2 * Fip:2 * Fip + Fint]
    sq_ux = st[3 * Fip:3 * Fip + Fint]

    mean_ug = sum_ug / M
    var_g = jnp.maximum(sq_ug / M - mean_ug * mean_ug, 0.0)   # biased variance
    inv_g = jax.lax.rsqrt(var_g + EPS)
    mean_ux = sum_ux / M
    var_x = jnp.maximum(sq_ux / M - mean_ux * mean_ux, 0.0)
    inv_x = jax.lax.rsqrt(var_x + EPS)

    # Conv biases only shift the mean -> cancel exactly under batch-stat BN.
    c_all = -(mean_ug * inv_g) - (mean_ux * inv_x)             # BN(yg)+BN(yx) offset

    # BN scale folded into the (tiny, VMEM-resident) conv weights.
    ag = jnp.zeros((Fip, Fgp), jnp.float32).at[:Fint, :Fg].set(inv_g[:, None] * wg_oi)
    ax = jnp.zeros((Fip, Flp), jnp.float32).at[:Fint, :Fl].set(inv_x[:, None] * wx_oi)
    ag = ag.astype(jnp.bfloat16)
    ax = ax.astype(jnp.bfloat16)

    wpsi = params["psi_w"].reshape(Fint).astype(jnp.float32)
    cvec = jnp.zeros((Fip,), jnp.float32).at[:Fint].set(c_all)
    wcol = jnp.zeros((Fip,), jnp.float32).at[:Fint].set(wpsi)
    prm = jnp.concatenate(
        [jnp.broadcast_to(cvec[:, None], (Fip, TP)),
         jnp.broadcast_to(wcol[:, None], (Fip, TP))], axis=0)   # (2*Fip, TP)

    # ---- pass 2: relu(BN(W_g g) + BN(W_x x)) -> psi conv -> gate logits z ----
    z3 = pl.pallas_call(
        _gate_logits_kernel,
        out_shape=jax.ShapeDtypeStruct((N, 8, Pp), jnp.float32),
        grid=(N, Pt),
        in_specs=[
            pl.BlockSpec((1, Fgp, TP), lambda n, p: (n, 0, p)),
            pl.BlockSpec((1, Flp, TP), lambda n, p: (n, 0, p)),
            pl.BlockSpec((Fip, Fgp), lambda n, p: (0, 0)),
            pl.BlockSpec((Fip, Flp), lambda n, p: (0, 0)),
            pl.BlockSpec((2 * Fip, TP), lambda n, p: (0, 0)),
        ],
        out_specs=pl.BlockSpec((1, 8, TP), lambda n, p: (n, 0, p)),
        compiler_params=cp,
    )(g3, x3, ag, ax, prm)

    # BN statistics of the single psi channel (tiny) in plain JAX; the psi conv
    # bias also cancels under batch-stat BN and is omitted.
    zv = z3[:, 0, :P]
    mean_z = jnp.mean(zv)
    inv_z = jax.lax.rsqrt(jnp.var(zv) + EPS)
    zprm = jnp.zeros((8, TP), jnp.float32).at[0, :].set(mean_z).at[1, :].set(inv_z)

    # ---- pass 3: out = x * sigmoid(BN(z)) ------------------------------------
    out3 = pl.pallas_call(
        _apply_gate_kernel,
        out_shape=jax.ShapeDtypeStruct((N, Flp, Pp), jnp.float32),
        grid=(N, Pt),
        in_specs=[
            pl.BlockSpec((1, Flp, TP), lambda n, p: (n, 0, p)),
            pl.BlockSpec((1, 8, TP), lambda n, p: (n, 0, p)),
            pl.BlockSpec((8, TP), lambda n, p: (0, 0)),
        ],
        out_specs=pl.BlockSpec((1, Flp, TP), lambda n, p: (n, 0, p)),
        compiler_params=cp,
    )(x3, z3, zprm)

    # Channel-major throughout -> only a slice + reshape, no transpose.
    return out3[:, :Fl, :P].reshape(N, Fl, H, W)


# --------------------------------------------------------------------------
# Pure-JAX reference (training-mode BN, batch stats, gamma=1, beta=0)
# --------------------------------------------------------------------------
def attention_block_reference(g, x, params):
    def bn(y):
        mean = y.mean(axis=(0, 2, 3), keepdims=True)
        var = y.var(axis=(0, 2, 3), keepdims=True)
        return (y - mean) * jax.lax.rsqrt(var + EPS)

    def conv1x1(y, w, b):
        w2 = w.reshape(w.shape[0], w.shape[1])
        return jnp.einsum("oi,nihw->nohw", w2, y) + b[None, :, None, None]

    g1 = bn(conv1x1(g, params["Wg_w"], params["Wg_b"]))
    x1 = bn(conv1x1(x, params["Wx_w"], params["Wx_b"]))
    s = jax.nn.relu(g1 + x1)
    psi = jax.nn.sigmoid(bn(conv1x1(s, params["psi_w"], params["psi_b"])))
    return x * psi


# --------------------------------------------------------------------------
# Deterministic parameter construction (shapes mirror the PyTorch module)
# --------------------------------------------------------------------------
def make_params(key, F_g, F_l, F_int):
    ks = jax.random.split(key, 6)

    def nrm(k, shape, fan_in):
        return jax.random.normal(k, shape, jnp.float32) / math.sqrt(fan_in)

    return {
        "Wg_w": nrm(ks[0], (F_int, F_g, 1, 1), F_g),
        "Wg_b": nrm(ks[1], (F_int,), F_g),
        "Wx_w": nrm(ks[2], (F_int, F_l, 1, 1), F_l),
        "Wx_b": nrm(ks[3], (F_int,), F_l),
        "psi_w": nrm(ks[4], (1, F_int, 1, 1), F_int),
        "psi_b": nrm(ks[5], (1,), F_int),
    }


if __name__ == "__main__":
    key = jax.random.PRNGKey(0)
    kg, kx, kp = jax.random.split(key, 3)

    N, F_g, F_l, F_int, H, W = 2, 32, 32, 16, 16, 16
    params = make_params(kp, F_g, F_l, F_int)
    g = jax.random.normal(kg, (N, F_g, H, W), jnp.float32)
    x = jax.random.normal(kx, (N, F_l, H, W), jnp.float32)

    fwd = jax.jit(attention_block)
    out = jax.block_until_ready(fwd(g, x, params))

    assert out.shape == (N, F_l, H, W), out.shape
    assert bool(jnp.all(jnp.isfinite(out)))

    # bf16 activation/weight streaming is an intentional bandwidth trade-off,
    # so compare against the f32 reference with a correspondingly loose bound.
    ref = attention_block_reference(g, x, params)
    max_err = float(jnp.max(jnp.abs(out - ref)))
    assert bool(jnp.allclose(out, ref, atol=0.15, rtol=0.15)), max_err

    print("KERNEL_OK")
</pallas_src>

<mosaic_0001>
module attributes {stable_mosaic.version = 11 : i64} {
  func.func @_conv_stats_kernel(%arg0: i32, %arg1: i32, %arg2: memref<1x32x128xbf16, #tpu.memory_space<vmem>>, %arg3: memref<1x32x128xbf16, #tpu.memory_space<vmem>>, %arg4: memref<16x32xbf16, #tpu.memory_space<vmem>>, %arg5: memref<16x32xbf16, #tpu.memory_space<vmem>>, %arg6: memref<1x64x128xf32, #tpu.memory_space<vmem>>) attributes {dimension_semantics = [#tpu.dimension_semantics<parallel>, #tpu.dimension_semantics<parallel>], iteration_bounds = array<i64: 2, 2>, scalar_prefetch = 0 : i64, scratch_operands = 0 : i64, tpu.core_type = #tpu.core_type<tc>, window_params = [{transform_indices = @transform_0, window_bounds = array<i64: 1, 32, 128>}, {transform_indices = @transform_1, window_bounds = array<i64: 1, 32, 128>}, {pipeline_mode = #tpu.pipeline_mode<synchronous>, transform_indices = @transform_2, window_bounds = array<i64: 16, 32>}, {pipeline_mode = #tpu.pipeline_mode<synchronous>, transform_indices = @transform_3, window_bounds = array<i64: 16, 32>}, {transform_indices = @transform_4, window_bounds = array<i64: 1, 64, 128>}]} {
    %c0 = arith.constant 0 : index
    %c0_0 = arith.constant 0 : index
    %0 = vector.load %arg4[%c0, %c0_0] : memref<16x32xbf16, #tpu.memory_space<vmem>>, vector<16x32xbf16>
    %c0_1 = arith.constant 0 : index
    %c0_2 = arith.constant 0 : index
    %c0_3 = arith.constant 0 : index
    %1 = vector.load %arg2[%c0_1, %c0_2, %c0_3] : memref<1x32x128xbf16, #tpu.memory_space<vmem>>, vector<1x32x128xbf16>
    %2 = vector.shape_cast %1 : vector<1x32x128xbf16> to vector<32x128xbf16>
    %cst = arith.constant dense<0.000000e+00> : vector<16x128xf32>
    %3 = tpu.matmul %0, %2, %cst {dimension_numbers = #tpu.dot_dimension_numbers<[1], [0], [0], [1], [0, 0, 1, 1], [], []>} : vector<16x32xbf16>, vector<32x128xbf16>, vector<16x128xf32> -> vector<16x128xf32>
    %c0_4 = arith.constant 0 : index
    %c0_5 = arith.constant 0 : index
    %4 = vector.load %arg5[%c0_4, %c0_5] : memref<16x32xbf16, #tpu.memory_space<vmem>>, vector<16x32xbf16>
    %c0_6 = arith.constant 0 : index
    %c0_7 = arith.constant 0 : index
    %c0_8 = arith.constant 0 : index
    %5 = vector.load %arg3[%c0_6, %c0_7, %c0_8] : memref<1x32x128xbf16, #tpu.memory_space<vmem>>, vector<1x32x128xbf16>
    %6 = vector.shape_cast %5 : vector<1x32x128xbf16> to vector<32x128xbf16>
    %cst_9 = arith.constant dense<0.000000e+00> : vector<16x128xf32>
    %7 = tpu.matmul %4, %6, %cst_9 {dimension_numbers = #tpu.dot_dimension_numbers<[1], [0], [0], [1], [0, 0, 1, 1], [], []>} : vector<16x32xbf16>, vector<32x128xbf16>, vector<16x128xf32> -> vector<16x128xf32>
    %cst_10 = arith.constant dense<0.000000e+00> : vector<16xf32>
    %8 = vector.multi_reduction <add>, %3, %cst_10 [1] : vector<16x128xf32> to vector<16xf32>
    %9 = vector.shape_cast %8 : vector<16xf32> to vector<16x1xf32>
    %10 = vector.shape_cast %9 : vector<16x1xf32> to vector<16x1xf32>
    %11 = vector.broadcast %10 : vector<16x1xf32> to vector<16x128xf32>
    %12 = arith.mulf %3, %3 : vector<16x128xf32>
    %cst_11 = arith.constant dense<0.000000e+00> : vector<16xf32>
    %13 = vector.multi_reduction <add>, %12, %cst_11 [1] : vector<16x128xf32> to vector<16xf32>
    %14 = vector.shape_cast %13 : vector<16xf32> to vector<16x1xf32>
    %15 = vector.shape_cast %14 : vector<16x1xf32> to vector<16x1xf32>
    %16 = vector.broadcast %15 : vector<16x1xf32> to vector<16x128xf32>
    %cst_12 = arith.constant dense<0.000000e+00> : vector<16xf32>
    %17 = vector.multi_reduction <add>, %7, %cst_12 [1] : vector<16x128xf32> to vector<16xf32>
    %18 = vector.shape_cast %17 : vector<16xf32> to vector<16x1xf32>
    %19 = vector.shape_cast %18 : vector<16x1xf32> to vector<16x1xf32>
    %20 = vector.broadcast %19 : vector<16x1xf32> to vector<16x128xf32>
    %21 = arith.mulf %7, %7 : vector<16x128xf32>
    %cst_13 = arith.constant dense<0.000000e+00> : vector<16xf32>
    %22 = vector.multi_reduction <add>, %21, %cst_13 [1] : vector<16x128xf32> to vector<16xf32>
    %23 = vector.shape_cast %22 : vector<16xf32> to vector<16x1xf32>
    %24 = vector.shape_cast %23 : vector<16x1xf32> to vector<16x1xf32>
    %25 = vector.broadcast %24 : vector<16x1xf32> to vector<16x128xf32>
    %26 = tpu.concatenate %11, %16, %20, %25 in 0 : vector<16x128xf32>, vector<16x128xf32>, vector<16x128xf32>, vector<16x128xf32> -> vector<64x128xf32>
    %c0_14 = arith.constant 0 : index
    %c0_15 = arith.constant 0 : index
    %c0_16 = arith.constant 0 : index
    %27 = vector.load %arg6[%c0_14, %c0_15, %c0_16] : memref<1x64x128xf32, #tpu.memory_space<vmem>>, vector<1x64x128xf32>
    %28 = vector.shape_cast %27 : vector<1x64x128xf32> to vector<64x128xf32>
    %29 = vector.shape_cast %26 : vector<64x128xf32> to vector<1x64x128xf32>
    tpu.vector_store %arg6[%c0_14, %c0_15, %c0_16], %29 {strides = array<i32>} : memref<1x64x128xf32, #tpu.memory_space<vmem>>, vector<1x64x128xf32>,
    return
  }
  func.func @transform_0(%arg0: i32, %arg1: i32) -> (i32, i32, i32) {
    %c0_i32 = arith.constant 0 : i32
    %c0_i32_0 = arith.constant 0 : i32
    return %arg0, %c0_i32, %arg1 : i32, i32, i32
  }
  func.func @transform_1(%arg0: i32, %arg1: i32) -> (i32, i32, i32) {
    %c0_i32 = arith.constant 0 : i32
    %c0_i32_0 = arith.constant 0 : i32
    return %arg0, %c0_i32, %arg1 : i32, i32, i32
  }
  func.func @transform_2(%arg0: i32, %arg1: i32) -> (i32, i32) {
    %c0_i32 = arith.constant 0 : i32
    %c0_i32_0 = arith.constant 0 : i32
    %c0_i32_1 = arith.constant 0 : i32
    return %c0_i32, %c0_i32_0 : i32, i32
  }
  func.func @transform_3(%arg0: i32, %arg1: i32) -> (i32, i32) {
    %c0_i32 = arith.constant 0 : i32
    %c0_i32_0 = arith.constant 0 : i32
    %c0_i32_1 = arith.constant 0 : i32
    return %c0_i32, %c0_i32_0 : i32, i32
  }
  func.func @transform_4(%arg0: i32, %arg1: i32) -> (i32, i32, i32) {
    %c2_i32 = arith.constant 2 : i32
    %0 = arith.muli %arg0, %c2_i32 : i32
    %1 = arith.addi %0, %arg1 : i32
    %c0_i32 = arith.constant 0 : i32
    %c0_i32_0 = arith.constant 0 : i32
    %c0_i32_1 = arith.constant 0 : i32
    return %1, %c0_i32, %c0_i32_0 : i32, i32, i32
  }
}

module attributes {stable_mosaic.version = 11 : i64} {
  func.func @_gate_logits_kernel(%arg0: i32, %arg1: i32, %arg2: memref<1x32x128xbf16, #tpu.memory_space<vmem>>, %arg3: memref<1x32x128xbf16, #tpu.memory_space<vmem>>, %arg4: memref<16x32xbf16, #tpu.memory_space<vmem>>, %arg5: memref<16x32xbf16, #tpu.memory_space<vmem>>, %arg6: memref<32x128xf32, #tpu.memory_space<vmem>>, %arg7: memref<1x8x128xf32, #tpu.memory_space<vmem>>) attributes {dimension_semantics = [#tpu.dimension_semantics<parallel>, #tpu.dimension_semantics<parallel>], iteration_bounds = array<i64: 2, 2>, scalar_prefetch = 0 : i64, scratch_operands = 0 : i64, tpu.core_type = #tpu.core_type<tc>, window_params = [{transform_indices = @transform_0, window_bounds = array<i64: 1, 32, 128>}, {transform_indices = @transform_1, window_bounds = array<i64: 1, 32, 128>}, {pipeline_mode = #tpu.pipeline_mode<synchronous>, transform_indices = @transform_2, window_bounds = array<i64: 16, 32>}, {pipeline_mode = #tpu.pipeline_mode<synchronous>, transform_indices = @transform_3, window_bounds = array<i64: 16, 32>}, {pipeline_mode = #tpu.pipeline_mode<synchronous>, transform_indices = @transform_4, window_bounds = array<i64: 32, 128>}, {transform_indices = @transform_5, window_bounds = array<i64: 1, 8, 128>}]} {
    %c0 = arith.constant 0 : index
    %c0_0 = arith.constant 0 : index
    %0 = vector.load %arg4[%c0, %c0_0] : memref<16x32xbf16, #tpu.memory_space<vmem>>, vector<16x32xbf16>
    %c0_1 = arith.constant 0 : index
    %c0_2 = arith.constant 0 : index
    %c0_3 = arith.constant 0 : index
    %1 = vector.load %arg2[%c0_1, %c0_2, %c0_3] : memref<1x32x128xbf16, #tpu.memory_space<vmem>>, vector<1x32x128xbf16>
    %2 = vector.shape_cast %1 : vector<1x32x128xbf16> to vector<32x128xbf16>
    %cst = arith.constant dense<0.000000e+00> : vector<16x128xf32>
    %3 = tpu.matmul %0, %2, %cst {dimension_numbers = #tpu.dot_dimension_numbers<[1], [0], [0], [1], [0, 0, 1, 1], [], []>} : vector<16x32xbf16>, vector<32x128xbf16>, vector<16x128xf32> -> vector<16x128xf32>
    %c0_4 = arith.constant 0 : index
    %c0_5 = arith.constant 0 : index
    %4 = vector.load %arg5[%c0_4, %c0_5] : memref<16x32xbf16, #tpu.memory_space<vmem>>, vector<16x32xbf16>
    %c0_6 = arith.constant 0 : index
    %c0_7 = arith.constant 0 : index
    %c0_8 = arith.constant 0 : index
    %5 = vector.load %arg3[%c0_6, %c0_7, %c0_8] : memref<1x32x128xbf16, #tpu.memory_space<vmem>>, vector<1x32x128xbf16>
    %6 = vector.shape_cast %5 : vector<1x32x128xbf16> to vector<32x128xbf16>
    %cst_9 = arith.constant dense<0.000000e+00> : vector<16x128xf32>
    %7 = tpu.matmul %4, %6, %cst_9 {dimension_numbers = #tpu.dot_dimension_numbers<[1], [0], [0], [1], [0, 0, 1, 1], [], []>} : vector<16x32xbf16>, vector<32x128xbf16>, vector<16x128xf32> -> vector<16x128xf32>
    %8 = arith.addf %3, %7 : vector<16x128xf32>
    %c0_10 = arith.constant 0 : index
    %c0_11 = arith.constant 0 : index
    %9 = vector.load %arg6[%c0_10, %c0_11] : memref<32x128xf32, #tpu.memory_space<vmem>>, vector<32x128xf32>
    %10 = vector.extract_strided_slice %9 {offsets = [0, 0], sizes = [16, 128], strides = [1, 1]} : vector<32x128xf32> to vector<16x128xf32>
    %11 = arith.addf %8, %10 : vector<16x128xf32>
    %cst_12 = arith.constant 0.000000e+00 : f32
    %12 = vector.broadcast %cst_12 : f32 to vector<16x128xf32>
    %13 = arith.maximumf %11, %12 : vector<16x128xf32>
    %14 = vector.extract_strided_slice %9 {offsets = [16, 0], sizes = [16, 128], strides = [1, 1]} : vector<32x128xf32> to vector<16x128xf32>
    %15 = arith.mulf %13, %14 : vector<16x128xf32>
    %cst_13 = arith.constant dense<0.000000e+00> : vector<128xf32>
    %16 = vector.multi_reduction <add>, %15, %cst_13 [0] : vector<16x128xf32> to vector<128xf32>
    %17 = vector.shape_cast %16 : vector<128xf32> to vector<1x128xf32>
    %18 = vector.shape_cast %17 : vector<1x128xf32> to vector<1x128xf32>
    %19 = vector.broadcast %18 : vector<1x128xf32> to vector<8x128xf32>
    %c0_14 = arith.constant 0 : index
    %c0_15 = arith.constant 0 : index
    %c0_16 = arith.constant 0 : index
    %20 = vector.load %arg7[%c0_14, %c0_15, %c0_16] : memref<1x8x128xf32, #tpu.memory_space<vmem>>, vector<1x8x128xf32>
    %21 = vector.shape_cast %20 : vector<1x8x128xf32> to vector<8x128xf32>
    %22 = vector.shape_cast %19 : vector<8x128xf32> to vector<1x8x128xf32>
    tpu.vector_store %arg7[%c0_14, %c0_15, %c0_16], %22 {strides = array<i32>} : memref<1x8x128xf32, #tpu.memory_space<vmem>>, vector<1x8x128xf32>,
    return
  }
  func.func @transform_0(%arg0: i32, %arg1: i32) -> (i32, i32, i32) {
    %c0_i32 = arith.constant 0 : i32
    %c0_i32_0 = arith.constant 0 : i32
    return %arg0, %c0_i32, %arg1 : i32, i32, i32
  }
  func.func @transform_1(%arg0: i32, %arg1: i32) -> (i32, i32, i32) {
    %c0_i32 = arith.constant 0 : i32
    %c0_i32_0 = arith.constant 0 : i32
    return %arg0, %c0_i32, %arg1 : i32, i32, i32
  }
  func.func @transform_2(%arg0: i32, %arg1: i32) -> (i32, i32) {
    %c0_i32 = arith.constant 0 : i32
    %c0_i32_0 = arith.constant 0 : i32
    %c0_i32_1 = arith.constant 0 : i32
    return %c0_i32, %c0_i32_0 : i32, i32
  }
  func.func @transform_3(%arg0: i32, %arg1: i32) -> (i32, i32) {
    %c0_i32 = arith.constant 0 : i32
    %c0_i32_0 = arith.constant 0 : i32
    %c0_i32_1 = arith.constant 0 : i32
    return %c0_i32, %c0_i32_0 : i32, i32
  }
  func.func @transform_4(%arg0: i32, %arg1: i32) -> (i32, i32) {
    %c0_i32 = arith.constant 0 : i32
    %c0_i32_0 = arith.constant 0 : i32
    %c0_i32_1 = arith.constant 0 : i32
    return %c0_i32, %c0_i32_0 : i32, i32
  }
  func.func @transform_5(%arg0: i32, %arg1: i32) -> (i32, i32, i32) {
    %c0_i32 = arith.constant 0 : i32
    %c0_i32_0 = arith.constant 0 : i32
    return %arg0, %c0_i32, %arg1 : i32, i32, i32
  }
}

module attributes {stable_mosaic.version = 11 : i64} {
  func.func @_apply_gate_kernel(%arg0: i32, %arg1: i32, %arg2: memref<1x32x128xbf16, #tpu.memory_space<vmem>>, %arg3: memref<1x8x128xf32, #tpu.memory_space<vmem>>, %arg4: memref<8x128xf32, #tpu.memory_space<vmem>>, %arg5: memref<1x32x128xf32, #tpu.memory_space<vmem>>) attributes {dimension_semantics = [#tpu.dimension_semantics<parallel>, #tpu.dimension_semantics<parallel>], iteration_bounds = array<i64: 2, 2>, scalar_prefetch = 0 : i64, scratch_operands = 0 : i64, tpu.core_type = #tpu.core_type<tc>, window_params = [{transform_indices = @transform_0, window_bounds = array<i64: 1, 32, 128>}, {transform_indices = @transform_1, window_bounds = array<i64: 1, 8, 128>}, {pipeline_mode = #tpu.pipeline_mode<synchronous>, transform_indices = @transform_2, window_bounds = array<i64: 8, 128>}, {transform_indices = @transform_3, window_bounds = array<i64: 1, 32, 128>}]} {
    %c0 = arith.constant 0 : index
    %c0_0 = arith.constant 0 : index
    %0 = vector.load %arg4[%c0, %c0_0] : memref<8x128xf32, #tpu.memory_space<vmem>>, vector<8x128xf32>
    %c0_1 = arith.constant 0 : index
    %c0_2 = arith.constant 0 : index
    %c0_3 = arith.constant 0 : index
    %1 = vector.load %arg3[%c0_1, %c0_2, %c0_3] : memref<1x8x128xf32, #tpu.memory_space<vmem>>, vector<1x8x128xf32>
    %2 = vector.shape_cast %1 : vector<1x8x128xf32> to vector<8x128xf32>
    %3 = vector.extract_strided_slice %2 {offsets = [0, 0], sizes = [1, 128], strides = [1, 1]} : vector<8x128xf32> to vector<1x128xf32>
    %4 = vector.extract_strided_slice %0 {offsets = [0, 0], sizes = [1, 128], strides = [1, 1]} : vector<8x128xf32> to vector<1x128xf32>
    %5 = arith.subf %3, %4 : vector<1x128xf32>
    %6 = vector.extract_strided_slice %0 {offsets = [1, 0], sizes = [1, 128], strides = [1, 1]} : vector<8x128xf32> to vector<1x128xf32>
    %7 = arith.mulf %5, %6 : vector<1x128xf32>
    %8 = arith.negf %7 : vector<1x128xf32>
    %9 = math.exp %8 : vector<1x128xf32>
    %cst = arith.constant 1.000000e+00 : f32
    %10 = vector.broadcast %cst : f32 to vector<1x128xf32>
    %11 = arith.addf %10, %9 : vector<1x128xf32>
    %12 = arith.divf %10, %11 : vector<1x128xf32>
    %c0_4 = arith.constant 0 : index
    %c0_5 = arith.constant 0 : index
    %c0_6 = arith.constant 0 : index
    %13 = vector.load %arg2[%c0_4, %c0_5, %c0_6] : memref<1x32x128xbf16, #tpu.memory_space<vmem>>, vector<1x32x128xbf16>
    %14 = vector.shape_cast %13 : vector<1x32x128xbf16> to vector<32x128xbf16>
    %15 = arith.extf %14 : vector<32x128xbf16> to vector<32x128xf32>
    %16 = vector.broadcast %12 : vector<1x128xf32> to vector<32x128xf32>
    %17 = arith.mulf %15, %16 : vector<32x128xf32>
    %c0_7 = arith.constant 0 : index
    %c0_8 = arith.constant 0 : index
    %c0_9 = arith.constant 0 : index
    %18 = vector.load %arg5[%c0_7, %c0_8, %c0_9] : memref<1x32x128xf32, #tpu.memory_space<vmem>>, vector<1x32x128xf32>
    %19 = vector.shape_cast %18 : vector<1x32x128xf32> to vector<32x128xf32>
    %20 = vector.shape_cast %17 : vector<32x128xf32> to vector<1x32x128xf32>
    tpu.vector_store %arg5[%c0_7, %c0_8, %c0_9], %20 {strides = array<i32>} : memref<1x32x128xf32, #tpu.memory_space<vmem>>, vector<1x32x128xf32>,
    return
  }
  func.func @transform_0(%arg0: i32, %arg1: i32) -> (i32, i32, i32) {
    %c0_i32 = arith.constant 0 : i32
    %c0_i32_0 = arith.constant 0 : i32
    return %arg0, %c0_i32, %arg1 : i32, i32, i32
  }
  func.func @transform_1(%arg0: i32, %arg1: i32) -> (i32, i32, i32) {
    %c0_i32 = arith.constant 0 : i32
    %c0_i32_0 = arith.constant 0 : i32
    return %arg0, %c0_i32, %arg1 : i32, i32, i32
  }
  func.func @transform_2(%arg0: i32, %arg1: i32) -> (i32, i32) {
    %c0_i32 = arith.constant 0 : i32
    %c0_i32_0 = arith.constant 0 : i32
    %c0_i32_1 = arith.constant 0 : i32
    return %c0_i32, %c0_i32_0 : i32, i32
  }
  func.func @transform_3(%arg0: i32, %arg1: i32) -> (i32, i32, i32) {
    %c0_i32 = arith.constant 0 : i32
    %c0_i32_0 = arith.constant 0 : i32
    return %arg0, %c0_i32, %arg1 : i32, i32, i32
  }
}

</mosaic_0001>

<bundles_post_ra>
// kernel: attention_block.3
= control target key start
LH: loop header
LB: loop body
LE: loop exit
PB: predicated region body
PF: predicated region fallthrough
CT: control target
= control target key end

     0   :  { %s821_s15 = smov 0   ;;  %s823_s16 = smov 0   ;;  %s930_s0 = inlined_call_operand.vmem [shape: bf16[2,32,256], index: 0, kind: input, shape index: {}]   ;;  %s931_s1 = inlined_call_operand.vmem [shape: bf16[2,32,256], index: 1, kind: input, shape index: {}]   ;;  %s932_s2 = inlined_call_operand.vmem [shape: bf16[16,32], index: 2, kind: input, shape index: {}]   ;;  %s933_s3 = inlined_call_operand.vmem [shape: bf16[16,32], index: 3, kind: input, shape index: {}]   ;;  %s934_s4 = inlined_call_operand.vmem [shape: f32[4,64,128], index: 4, kind: output, shape index: {}]  }
   0x1   :  { %s825_s17 = smov 0   ;;  %s827_s18 = smov 0  }
   0x2   :  { %s829_s19 = smov 0   ;;  %s831_s20 = smov 0  }
   0x3   :  { %s833_s21 = smov 0  }
   0x4 LB: > { %s23_s22 = sadd.s32 1, %s784_s19  ;;  %s26_s23 = sadd.s32 1, %s788_s20  ;;  %s792_s21 = sphi %s833_s21, %s14_s21   ;;  %s788_s20 = sphi %s831_s20, %s941_s20   ;;  %s784_s19 = sphi %s829_s19, %s940_s19   ;;  %s780_s18 = sphi %s827_s18, %s939_s18   ;;  %s776_s17 = sphi %s825_s17, %s938_s17   ;;  %s772_s16 = sphi %s823_s16, %s937_s16   ;;  %s768_s15 = sphi %s821_s15, %s936_s15  }
   0x5   : > { %p24_p0 = scmp.ge.s32.totalorder %s23_s22, 2  ;;  %p42_p1 = scmp.ne.s32.totalorder %s772_s16, %s768_s15 }
   0x6   : > { %p43_p2 = scmp.eq.s32.totalorder %s792_s21, 0  ;;  %s35_s28 = sadd.s32 1, %s772_s16 }
   0x7   : > { %s943_s22 = smov (%p24_p0, %s23_s22), 0  ;;  %s945_s23 = smov (!%p24_p0, %s26_s23), %s788_s20 }
   0x8   : > { %p864_p3 = por %p43_p2, %p42_p1  ;;  %p28_p4 = scmp.ge.s32.totalorder %s945_s23, 2 }
   0x9   : > { %s31_s25 = ssub.s32 %s784_s19, %s943_s22  ;;  %p628_p6 = scmp.ge.s32.totalorder %s792_s21, 4 }
   0xa   : > { %s947_s23 = smov (%p28_p4, %s945_s23), 0 }
   0xb   : > { %s30_s26 = ssub.s32 %s788_s20, %s947_s23  ;;  %174 = sbr.rel (%p628_p6) target bundleno = 32 (0x20), region = 24 }
   0xc   : > { %s32_s27 = sor.u32 %s31_s25, %s30_s26 }
   0xd   : > { %p33_p5 = scmp.eq.s32.totalorder %s32_s27, 0 }
   0xf   : > { %s876_s29 = scalar_select %p33_p5, %s772_s16, %s35_s28  }
  0x10   : > { %177 = sbr.rel (!%p864_p3) target bundleno = 24 (0x18), region = 28  ;;  %s179_s30 = sand.u32 (%p864_p3), 1, %s772_s16  }
  0x11   : > { %s630_s5 = sshll.u32 (%p864_p3), %s788_s20, 3  ;;  %s629_s6 = sshll.u32 (%p864_p3), %s179_s30, 4 }
  0x12   : > { %s183_s7 = sadd.s32 (%p864_p3), %s784_s19, %s630_s5  ;;  %s181_s12 = scalar_lea.vmem (%p864_p3), [#allocation2], %s629_s6 }
  0x13   : > { %s631_s8 = sshll.u32 (%p864_p3), %s183_s7, 2 }
  0x14   : > { %s185_s11 = scalar_lea.vmem (%p864_p3), %s930_s0, %s631_s8 }
  0x15   : > { %v202_v0 = vld [vmem:[%s185_s11] sm:$0xf]  ;;  %v204_v1 = vld [vmem:[%s185_s11 + $0x8] sm:$0xf]  ;;  %v206_v2 = vld [vmem:[%s185_s11 + $0x10] sm:$0xf] }
  0x16   : > { %203 = vst [vmem:[%s181_s12] sm:$0xf] %v202_v0  ;;  %205 = vst [vmem:[%s181_s12 + $0x4] sm:$0xf] %v204_v1  ;;  %v208_v3 = vld [vmem:[%s185_s11 + $0x18] sm:$0xf] }
  0x17   : > { %207 = vst [vmem:[%s181_s12 + $0x8] sm:$0xf] %v206_v2  ;;  %209 = vst [vmem:[%s181_s12 + $0xc] sm:$0xf] %v208_v3 }
  0x18 PF: > { %241 = sbr.rel (!%p864_p3) target bundleno = 32 (0x20), region = 69  ;;  %s243_s13 = sand.u32 (%p864_p3), 1, %s772_s16  }
  0x19   : > { %s633_s14 = sshll.u32 (%p864_p3), %s788_s20, 3  ;;  %s632_s25 = sshll.u32 (%p864_p3), %s243_s13, 4 }
  0x1a   : > { %s247_s26 = sadd.s32 (%p864_p3), %s784_s19, %s633_s14  ;;  %s245_s6 = scalar_lea.vmem (%p864_p3), [#allocation3], %s632_s25 }
  0x1b   : > { %s634_s27 = sshll.u32 (%p864_p3), %s247_s26, 2 }
  0x1c   : > { %s249_s5 = scalar_lea.vmem (%p864_p3), %s931_s1, %s634_s27 }
  0x1d   : > { %v266_v4 = vld [vmem:[%s249_s5] sm:$0xf]  ;;  %v268_v5 = vld [vmem:[%s249_s5 + $0x8] sm:$0xf]  ;;  %v270_v6 = vld [vmem:[%s249_s5 + $0x10] sm:$0xf] }
  0x1e   : > { %267 = vst [vmem:[%s245_s6] sm:$0xf] %v266_v4  ;;  %269 = vst [vmem:[%s245_s6 + $0x4] sm:$0xf] %v268_v5  ;;  %v272_v7 = vld [vmem:[%s249_s5 + $0x18] sm:$0xf] }
  0x1f   : > { %271 = vst [vmem:[%s245_s6 + $0x8] sm:$0xf] %v270_v6  ;;  %273 = vst [vmem:[%s245_s6 + $0xc] sm:$0xf] %v272_v7 }
  0x20 PF: > { %p635_p7 = scmp.ge.s32.totalorder %s792_s21, 1  ;;  %p304_p8 = scmp.lt.s32.totalorder %s792_s21, 5 }
  0x22   : > { %p305_p9 = pnand %p635_p7, %p304_p8 }
  0x23   : > { %s311_s24 = sand.u32 (!%p305_p9), 1, %s768_s15   ;;  %s638_s13 = sshll.u32 (!%p305_p9), %s780_s18, 1 }
  0x24   : > { %308 = sbr.rel (%p305_p9) target bundleno = 397 (0x18d), region = 110  ;;  %s636_s7 = sshll.u32 (!%p305_p9), %s311_s24, 4 }
  0x25   : > { %s313_s8 = scalar_lea.vmem (!%p305_p9), [#allocation2], %s636_s7  ;;  %s320_s9 = scalar_lea.vmem (!%p305_p9), [#allocation3], %s636_s7 }
  0x26   : > { %s350_s14 = sadd.s32 (!%p305_p9), %s776_s17, %s638_s13 }
  0x27   : > { %p351_p10 = scmp.lt.s32.totalorder (!%p305_p9), %s350_s14, 3 }
  0x29   : > { %v794_v8 = vmov 0.0   ;;  %vm795_vm0 = vmmov 0   ;;  %v732_v9 = vld [vmem:[%s313_s8 + $0x8] sm:$0xff]   ;;  %v734_v11 = vld [vmem:[%s313_s8] sm:$0xff]   ;;  %vm382_vm1 = vcmask 261120   ;;  %s949_s14 = smov (!%p351_p10, %s350_s14), 3 }
  0x2a   : > { %658 = vmatprep.subr.bf16.mxu0 %v794_v8  ;;  %666 = vmatprep.subr.bf16.mxu1 %v794_v8  ;;  %v733_v10 = vld [vmem:[%s320_s9 + $0x8] sm:$0xff]   ;;  %v735_v12 = vld [vmem:[%s320_s9] sm:$0xff]   ;;  %s651_s25 = sshll.u32 %s949_s14, 6 }
  0x2b   : > { %662 = vmatprep.mubr.msk.bf16.mxu0 %vm795_vm0, %v794_v8  ;;  %670 = vmatprep.mubr.msk.bf16.mxu1 %vm795_vm0, %v794_v8  ;;  %v736_v13 = vld [vmem:[%s932_s2] sm:$0xff]   ;;  %s355_s28 = scalar_lea.vmem %s934_s4, %s651_s25 }
  0x2c   : > { %659 = vmatpush3.bf16.msra.mxu0 %v732_v9  ;;  %667 = vmatpush3.bf16.msra.mxu1 %v733_v10  ;;  %v737_v14 = vld [vmem:[%s933_s3] sm:$0xff]  }
  0x2d   : > { %660 = vmatprep.subr.bf16.mxu0 %v794_v8  ;;  %668 = vmatprep.subr.bf16.mxu1 %v794_v8 }
  0x30   : > { %661 = vmatpush3.bf16.msra.mxu0 %v734_v11  ;;  %669 = vmatpush3.bf16.msra.mxu1 %v735_v12 }
  0x33   : > { %663 = vmatmul.mubr.msk.bf16.vlgmr.msra.gmra.mxu0 %vm382_vm1, %v736_v13  ;;  %671 = vmatmul.mubr.msk.bf16.vlgmr.msra.gmra.mxu1 %vm382_vm1, %v737_v14 }
  0xf3   : > { %v420_v15 = vpop.f32.mrf.mxu0  ;;  %v487_v16 = vpop.f32.mrf.mxu1 }
  0xf4   : > { %494 = vadd.xlane.f32.xlu0 %v420_v15  ;;  %v498_v17 = vmul.f32 %v420_v15, %v420_v15  ;;  %v508_v25 = vmul.f32 %v487_v16, %v487_v16 }
  0xf5   : > { %v664_v18 = vpop.f32.mrf.mxu0  ;;  %v672_v19 = vpop.f32.mrf.mxu1 }
  0xf6   : > { %500 = vadd.xlane.f32.xlu1 %v498_v17 }
  0xf7   : > { %v423_v20 = vpop.f32.mrf.mxu0  ;;  %v490_v21 = vpop.f32.mrf.mxu1 }
  0xf8   : > { %504 = vadd.xlane.f32.xlu0 %v487_v16  ;;  %v499_v24 = vmul.f32 %v423_v20, %v423_v20  ;;  %v509_v26 = vmul.f32 %v490_v21, %v490_v21 }
  0xf9   : > { %v665_v22 = vpop.f32.mrf.mxu0  ;;  %v673_v23 = vpop.f32.mrf.mxu1 }
  0xfa   : > { %506 = vadd.xlane.f32.xlu1 %v490_v21 }
  0xfc   : > { %496 = vadd.xlane.f32.xlu0 %v423_v20 }
  0xfe   : > { %502 = vadd.xlane.f32.xlu1 %v499_v24 }
 0x100   : > { %510 = vadd.xlane.f32.xlu0 %v508_v25 }
 0x102   : > { %512 = vadd.xlane.f32.xlu1 %v509_v26 }
 0x17d   : > { %v495_v27 = vpop.xlane.xlu0 %494 }
 0x17e   : > { %514 = vst [vmem:[%s355_s28] sm:$0xff] %v495_v27 }
 0x17f   : > { %v501_v28 = vpop.xlane.xlu1 %500 }
 0x180   : > { %516 = vst [vmem:[%s355_s28 + $0x10] sm:$0xff] %v501_v28 }
 0x181   : > { %v505_v29 = vpop.xlane.xlu0 %504 }
 0x182   : > { %518 = vst [vmem:[%s355_s28 + $0x20] sm:$0xff] %v505_v29 }
 0x183   : > { %v507_v30 = vpop.xlane.xlu1 %506 }
 0x184   : > { %519 = vst [vmem:[%s355_s28 + $0x28] sm:$0xff] %v507_v30 }
 0x185   : > { %v497_v31 = vpop.xlane.xlu0 %496 }
 0x186   : > { %515 = vst [vmem:[%s355_s28 + $0x8] sm:$0xff] %v497_v31 }
 0x187   : > { %v503_v32 = vpop.xlane.xlu1 %502 }
 0x188   : > { %517 = vst [vmem:[%s355_s28 + $0x18] sm:$0xff] %v503_v32 }
 0x189   : > { %v511_v33 = vpop.xlane.xlu0 %510 }
 0x18a   : > { %520 = vst [vmem:[%s355_s28 + $0x30] sm:$0xff] %v511_v33 }
 0x18b   : > { %v513_v34 = vpop.xlane.xlu1 %512 }
 0x18c   : > { %521 = vst [vmem:[%s355_s28 + $0x38] sm:$0xff] %v513_v34 }
 0x18d PF: > { %s14_s21 = sadd.s32 1, %s792_s21   ;;  %s936_s15 = smov %s772_s16 }
 0x18e   : > { %p11_p11 = scmp.ge.s32.totalorder %s14_s21, 6   ;;  %s937_s16 = smov %s876_s29 }
 0x18f   : > { %s938_s17 = smov %s784_s19  ;;  %s939_s18 = smov %s788_s20 }
 0x190   : > { %s940_s19 = smov %s943_s22  ;;  %s941_s20 = smov %s947_s23 }
 0x191   :  { %13 = sbr.rel (!%p11_p11) target bundleno = 4 (0x4), region = 161 }

// kernel: attention_block.4
= control target key start
LH: loop header
LB: loop body
LE: loop exit
PB: predicated region body
PF: predicated region fallthrough
CT: control target
= control target key end

     0   :  { %s844_s18 = smov 0   ;;  %s846_s19 = smov 0   ;;  %s967_s0 = inlined_call_operand.vmem [shape: bf16[2,32,256], index: 0, kind: input, shape index: {}]   ;;  %s968_s1 = inlined_call_operand.vmem [shape: bf16[2,32,256], index: 1, kind: input, shape index: {}]   ;;  %s969_s2 = inlined_call_operand.vmem [shape: bf16[16,32], index: 2, kind: input, shape index: {}]   ;;  %s970_s3 = inlined_call_operand.vmem [shape: bf16[16,32], index: 3, kind: input, shape index: {}]   ;;  %s971_s4 = inlined_call_operand.vmem [shape: f32[32,128], index: 4, kind: input, shape index: {}]   ;;  %s972_s5 = inlined_call_operand.vmem [shape: f32[2,8,256], index: 5, kind: output, shape index: {}]  }
   0x1   :  { %s848_s20 = smov 0   ;;  %s850_s21 = smov 0  }
   0x2   :  { %s852_s22 = smov 0   ;;  %s854_s23 = smov 0  }
   0x3   :  { %s856_s24 = smov 0  }
   0x4 LB: > { %s24_s25 = sadd.s32 1, %s802_s22  ;;  %s27_s26 = sadd.s32 1, %s806_s23  ;;  %s810_s24 = sphi %s856_s24, %s15_s24   ;;  %s806_s23 = sphi %s854_s23, %s979_s23   ;;  %s802_s22 = sphi %s852_s22, %s978_s22   ;;  %s798_s21 = sphi %s850_s21, %s977_s21   ;;  %s794_s20 = sphi %s848_s20, %s976_s20   ;;  %s790_s19 = sphi %s846_s19, %s975_s19   ;;  %s786_s18 = sphi %s844_s18, %s974_s18  }
   0x5   : > { %p25_p0 = scmp.ge.s32.totalorder %s24_s25, 2  ;;  %p43_p1 = scmp.ne.s32.totalorder %s790_s19, %s786_s18 }
   0x6   : > { %p44_p2 = scmp.eq.s32.totalorder %s810_s24, 0  ;;  %s36_s6 = sadd.s32 1, %s790_s19 }
   0x7   : > { %s981_s25 = smov (%p25_p0, %s24_s25), 0  ;;  %s983_s26 = smov (!%p25_p0, %s27_s26), %s806_s23 }
   0x8   : > { %p887_p3 = por %p44_p2, %p43_p1  ;;  %p29_p4 = scmp.ge.s32.totalorder %s983_s26, 2 }
   0x9   : > { %s32_s28 = ssub.s32 %s802_s22, %s981_s25  ;;  %p648_p6 = scmp.ge.s32.totalorder %s810_s24, 4 }
   0xa   : > { %s985_s26 = smov (%p29_p4, %s983_s26), 0 }
   0xb   : > { %s31_s29 = ssub.s32 %s806_s23, %s985_s26  ;;  %197 = sbr.rel (%p648_p6) target bundleno = 32 (0x20), region = 28 }
   0xc   : > { %s33_s30 = sor.u32 %s32_s28, %s31_s29 }
   0xd   : > { %p34_p5 = scmp.eq.s32.totalorder %s33_s30, 0 }
   0xf   : > { %s899_s7 = scalar_select %p34_p5, %s790_s19, %s36_s6  }
  0x10   : > { %200 = sbr.rel (!%p887_p3) target bundleno = 24 (0x18), region = 32  ;;  %s202_s8 = sand.u32 (%p887_p3), 1, %s790_s19  }
  0x11   : > { %s650_s9 = sshll.u32 (%p887_p3), %s806_s23, 3  ;;  %s649_s10 = sshll.u32 (%p887_p3), %s202_s8, 4 }
  0x12   : > { %s206_s11 = sadd.s32 (%p887_p3), %s802_s22, %s650_s9  ;;  %s204_s16 = scalar_lea.vmem (%p887_p3), [#allocation2], %s649_s10 }
  0x13   : > { %s651_s12 = sshll.u32 (%p887_p3), %s206_s11, 2 }
  0x14   : > { %s208_s15 = scalar_lea.vmem (%p887_p3), %s967_s0, %s651_s12 }
  0x15   : > { %v225_v0 = vld [vmem:[%s208_s15] sm:$0xf]  ;;  %v227_v1 = vld [vmem:[%s208_s15 + $0x8] sm:$0xf]  ;;  %v229_v2 = vld [vmem:[%s208_s15 + $0x10] sm:$0xf] }
  0x16   : > { %226 = vst [vmem:[%s204_s16] sm:$0xf] %v225_v0  ;;  %228 = vst [vmem:[%s204_s16 + $0x4] sm:$0xf] %v227_v1  ;;  %v231_v3 = vld [vmem:[%s208_s15 + $0x18] sm:$0xf] }
  0x17   : > { %230 = vst [vmem:[%s204_s16 + $0x8] sm:$0xf] %v229_v2  ;;  %232 = vst [vmem:[%s204_s16 + $0xc] sm:$0xf] %v231_v3 }
  0x18 PF: > { %264 = sbr.rel (!%p887_p3) target bundleno = 32 (0x20), region = 73  ;;  %s266_s17 = sand.u32 (%p887_p3), 1, %s790_s19  }
  0x19   : > { %s653_s28 = sshll.u32 (%p887_p3), %s806_s23, 3  ;;  %s652_s29 = sshll.u32 (%p887_p3), %s266_s17, 4 }
  0x1a   : > { %s270_s30 = sadd.s32 (%p887_p3), %s802_s22, %s653_s28  ;;  %s268_s11 = scalar_lea.vmem (%p887_p3), [#allocation3], %s652_s29 }
  0x1b   : > { %s654_s6 = sshll.u32 (%p887_p3), %s270_s30, 2 }
  0x1c   : > { %s272_s10 = scalar_lea.vmem (%p887_p3), %s968_s1, %s654_s6 }
  0x1d   : > { %v289_v4 = vld [vmem:[%s272_s10] sm:$0xf]  ;;  %v291_v5 = vld [vmem:[%s272_s10 + $0x8] sm:$0xf]  ;;  %v293_v6 = vld [vmem:[%s272_s10 + $0x10] sm:$0xf] }
  0x1e   : > { %290 = vst [vmem:[%s268_s11] sm:$0xf] %v289_v4  ;;  %292 = vst [vmem:[%s268_s11 + $0x4] sm:$0xf] %v291_v5  ;;  %v295_v7 = vld [vmem:[%s272_s10 + $0x18] sm:$0xf] }
  0x1f   : > { %294 = vst [vmem:[%s268_s11 + $0x8] sm:$0xf] %v293_v6  ;;  %296 = vst [vmem:[%s268_s11 + $0xc] sm:$0xf] %v295_v7 }
  0x20 PF: > { %p655_p7 = scmp.ge.s32.totalorder %s810_s24, 1  ;;  %p327_p8 = scmp.lt.s32.totalorder %s810_s24, 5 }
  0x22   : > { %p328_p9 = pnand %p655_p7, %p327_p8 }
  0x23   : > { %s334_s27 = sand.u32 (!%p328_p9), 1, %s786_s18   ;;  %p375_p10 = scmp.lt.s32.totalorder (!%p328_p9), %s798_s21, 1 }
  0x24   : > { %331 = sbr.rel (%p328_p9) target bundleno = 271 (0x10f), region = 114  ;;  %s656_s12 = sshll.u32 (!%p328_p9), %s334_s27, 4 }
  0x25   : > { %s343_s13 = scalar_lea.vmem (!%p328_p9), [#allocation3], %s656_s12  ;;  %s336_s14 = scalar_lea.vmem (!%p328_p9), [#allocation2], %s656_s12 }
  0x26   : > { %p377_p11 = scmp.lt.s32.totalorder (!%p328_p9), %s794_s20, 1 }
  0x29   : > { %v812_v8 = vmov 0.0   ;;  %vm813_vm0 = vmmov 0   ;;  %v750_v9 = vld [vmem:[%s343_s13 + $0x8] sm:$0xff]   ;;  %v752_v11 = vld [vmem:[%s343_s13] sm:$0xff]   ;;  %vm413_vm1 = vcmask 261120   ;;  %s987_s21 = smov (!%p375_p10, %s798_s21), 1 }
  0x2a   : > { %676 = vmatprep.subr.bf16.mxu0 %v812_v8  ;;  %684 = vmatprep.subr.bf16.mxu1 %v812_v8  ;;  %v751_v10 = vld [vmem:[%s336_s14 + $0x8] sm:$0xff]   ;;  %v753_v12 = vld [vmem:[%s336_s14] sm:$0xff]   ;;  %s989_s20 = smov (!%p377_p11, %s794_s20), 1  ;;  %s658_s27 = sshll.u32 %s987_s21, 1 }
  0x2b   : > { %680 = vmatprep.mubr.msk.bf16.mxu0 %vm813_vm0, %v812_v8  ;;  %688 = vmatprep.mubr.msk.bf16.mxu1 %vm813_vm0, %v812_v8  ;;  %v754_v13 = vld [vmem:[%s970_s3] sm:$0xff]   ;;  %v520_v24 = vld [vmem:[%s971_s4 + $0x8] sm:$0xff]  ;;  %v521_v30 = vld [vmem:[%s971_s4 + $0x10] sm:$0xff]  ;;  %s380_s12 = sadd.s32 %s658_s27, %s989_s20 }
  0x2c   : > { %677 = vmatpush3.bf16.msra.mxu0 %v750_v9  ;;  %685 = vmatpush3.bf16.msra.mxu1 %v751_v10  ;;  %v755_v14 = vld [vmem:[%s969_s2] sm:$0xff]   ;;  %v522_v31 = vld [vmem:[%s971_s4 + $0x18] sm:$0xff]  ;;  %s659_s13 = sshll.u32 %s380_s12, 3 }
  0x2d   : > { %678 = vmatprep.subr.bf16.mxu0 %v812_v8  ;;  %686 = vmatprep.subr.bf16.mxu1 %v812_v8  ;;  %v519_v17 = vld [vmem:[%s971_s4] sm:$0xff]  ;;  %s382_s16 = scalar_lea.vmem %s972_s5, %s659_s13 }
  0x30   : > { %679 = vmatpush3.bf16.msra.mxu0 %v752_v11  ;;  %687 = vmatpush3.bf16.msra.mxu1 %v753_v12 }
  0x33   : > { %681 = vmatmul.mubr.msk.bf16.vlgmr.msra.gmra.mxu0 %vm413_vm1, %v754_v13  ;;  %689 = vmatmul.mubr.msk.bf16.vlgmr.msra.gmra.mxu1 %vm413_vm1, %v755_v14 }
  0xf3   : > { %v451_v15 = vpop.f32.mrf.mxu0  ;;  %v512_v16 = vpop.f32.mrf.mxu1 }
  0xf4   : > { %v513_v18 = vadd.f32 %v512_v16, %v451_v15 }
  0xf5   : > { %v682_v19 = vpop.f32.mrf.mxu0  ;;  %v690_v20 = vpop.f32.mrf.mxu1 }
  0xf6   : > { %v523_v21 = vadd.f32 %v519_v17, %v513_v18 }
  0xf7   : > { %v454_v22 = vpop.f32.mrf.mxu0  ;;  %v515_v23 = vpop.f32.mrf.mxu1 }
  0xf8   : > { %v516_v25 = vadd.f32 %v515_v23, %v454_v22  ;;  %v525_v28 = vmax.f32 %v523_v21, 0.0 }
  0xf9   : > { %v683_v26 = vpop.f32.mrf.mxu0  ;;  %v691_v27 = vpop.f32.mrf.mxu1 }
  0xfa   : > { %v524_v29 = vadd.f32 %v520_v24, %v516_v25  ;;  %v527_v33 = vmul.f32 %v525_v28, %v521_v30 }
  0xfc   : > { %v526_v32 = vmax.f32 %v524_v29, 0.0 }
  0xfe   : > { %v528_v34 = vmul.f32 %v526_v32, %v522_v31 }
 0x100   : > { %v529_v35 = vadd.f32 %v528_v34, %v527_v33 }
 0x102   : > { %v530_v36 = vrot.slane %v529_v35, 4 }
 0x104   : > { %v531_v37 = vadd.f32 %v530_v36, %v529_v35 }
 0x106   : > { %v532_v38 = vrot.slane %v531_v37, 2 }
 0x108   : > { %v533_v39 = vadd.f32 %v532_v38, %v531_v37 }
 0x10a   : > { %v534_v40 = vrot.slane %v533_v39, 1 }
 0x10c   : > { %v535_v41 = vadd.f32 %v534_v40, %v533_v39 }
 0x10e   : > { %536 = vst [vmem:[%s382_s16] sm:$0xff] %v535_v41 }
 0x10f PF: > { %s15_s24 = sadd.s32 1, %s810_s24   ;;  %s974_s18 = smov %s790_s19 }
 0x110   : > { %p12_p12 = scmp.ge.s32.totalorder %s15_s24, 6   ;;  %s975_s19 = smov %s899_s7 }
 0x111   : > { %s976_s20 = smov %s802_s22  ;;  %s977_s21 = smov %s806_s23 }
 0x112   : > { %s978_s22 = smov %s981_s25  ;;  %s979_s23 = smov %s985_s26 }
 0x113   :  { %14 = sbr.rel (!%p12_p12) target bundleno = 4 (0x4), region = 165 }

// kernel: attention_block.5
= control target key start
LH: loop header
LB: loop body
LE: loop exit
PB: predicated region body
PF: predicated region fallthrough
CT: control target
= control target key end

     0   :  { %s611_s12 = smov 0   ;;  %s613_s13 = smov 0   ;;  %s717_s0 = inlined_call_operand.vmem [shape: bf16[2,32,256], index: 0, kind: input, shape index: {}]   ;;  %s718_s1 = inlined_call_operand.vmem [shape: f32[2,8,256], index: 1, kind: input, shape index: {}]   ;;  %s719_s2 = inlined_call_operand.vmem [shape: f32[8,128], index: 2, kind: input, shape index: {}]   ;;  %s720_s3 = inlined_call_operand.vmem [shape: f32[2,32,256], index: 3, kind: output, shape index: {}]  }
   0x1   :  { %s615_s14 = smov 0   ;;  %s617_s15 = smov 0  }
   0x2   :  { %s619_s16 = smov 0   ;;  %s621_s17 = smov 0  }
   0x3   :  { %s623_s18 = smov 0  }
   0x4 LB: > { %s22_s19 = sadd.s32 1, %s581_s16  ;;  %s25_s20 = sadd.s32 1, %s585_s17  ;;  %s589_s18 = sphi %s623_s18, %s13_s18   ;;  %s585_s17 = sphi %s621_s17, %s727_s17   ;;  %s581_s16 = sphi %s619_s16, %s726_s16   ;;  %s577_s15 = sphi %s617_s15, %s725_s15   ;;  %s573_s14 = sphi %s615_s14, %s724_s14   ;;  %s569_s13 = sphi %s613_s13, %s723_s13   ;;  %s565_s12 = sphi %s611_s12, %s722_s12  }
   0x5   : > { %p23_p0 = scmp.ge.s32.totalorder %s22_s19, 2  ;;  %s448_s21 = sadd.s32 4294967295, %s589_s18  }
   0x6   : > { %p41_p1 = scmp.ne.s32.totalorder %s569_s13, %s565_s12  ;;  %p42_p2 = scmp.eq.s32.totalorder %s589_s18, 0 }
   0x7   : > { %s729_s19 = smov (%p23_p0, %s22_s19), 0  ;;  %s731_s20 = smov (!%p23_p0, %s25_s20), %s585_s17 }
   0x8   : > { %p27_p3 = scmp.ge.s32.totalorder %s731_s20, 2  ;;  %p122_p4 = scmp.eq.s32.totalorder %s448_s21, 3 }
   0x9   : > { %s30_s22 = ssub.s32 %s581_s16, %s729_s19  ;;  %p43_p5 = por %p42_p2, %p41_p1 }
   0xa   : > { %s733_s20 = smov (%p27_p3, %s731_s20), 0  ;;  %p659_p6 = por %p122_p4, %p41_p1 }
   0xb   : > { %s29_s24 = ssub.s32 %s585_s17, %s733_s20  ;;  %s34_s26 = sadd.s32 1, %s569_s13 }
   0xc   : > { %s31_s25 = sor.u32 %s30_s22, %s29_s24  ;;  %p451_p8 = scmp.ge.s32.totalorder %s589_s18, 4 }
   0xd   : > { %p32_p7 = scmp.eq.s32.totalorder %s31_s25, 0 }
   0xe   : > { %147 = sbr.rel (%p451_p8) target bundleno = 27 (0x1b), region = 20 }
   0xf   : > { %s667_s27 = scalar_select %p32_p7, %s569_s13, %s34_s26  }
  0x13   : > { %150 = sbr.rel (!%p43_p5) target bundleno = 27 (0x1b), region = 24  ;;  %s152_s28 = sand.u32 (%p43_p5), 1, %s569_s13  }
  0x14   : > { %s453_s29 = sshll.u32 (%p43_p5), %s585_s17, 3  ;;  %s452_s30 = sshll.u32 (%p43_p5), %s152_s28, 4 }
  0x15   : > { %s156_s4 = sadd.s32 (%p43_p5), %s581_s16, %s453_s29  ;;  %s154_s9 = scalar_lea.vmem (%p43_p5), [#allocation2], %s452_s30 }
  0x16   : > { %s454_s5 = sshll.u32 (%p43_p5), %s156_s4, 2 }
  0x17   : > { %s158_s8 = scalar_lea.vmem (%p43_p5), %s717_s0, %s454_s5 }
  0x18   : > { %v175_v0 = vld [vmem:[%s158_s8] sm:$0xf]  ;;  %v177_v1 = vld [vmem:[%s158_s8 + $0x8] sm:$0xf]  ;;  %v179_v2 = vld [vmem:[%s158_s8 + $0x10] sm:$0xf] }
  0x19   : > { %176 = vst [vmem:[%s154_s9] sm:$0xf] %v175_v0  ;;  %178 = vst [vmem:[%s154_s9 + $0x4] sm:$0xf] %v177_v1  ;;  %v181_v3 = vld [vmem:[%s158_s8 + $0x18] sm:$0xf] }
  0x1a   : > { %180 = vst [vmem:[%s154_s9 + $0x8] sm:$0xf] %v179_v2  ;;  %182 = vst [vmem:[%s154_s9 + $0xc] sm:$0xf] %v181_v3 }
  0x1b PF: > { %p455_p9 = scmp.ge.s32.totalorder %s589_s18, 1  ;;  %p224_p10 = scmp.lt.s32.totalorder %s589_s18, 5 }
  0x1d   : > { %p225_p11 = pnand %p455_p9, %p224_p10 }
  0x1e   : > { %p261_p12 = scmp.lt.s32.totalorder (!%p225_p11), %s577_s15, 1  ;;  %p263_p13 = scmp.lt.s32.totalorder (!%p225_p11), %s573_s14, 1 }
  0x1f   : > { %228 = sbr.rel (%p225_p11) target bundleno = 93 (0x5d), region = 69  ;;  %s231_s4 = sand.u32 (!%p225_p11), 1, %s565_s12  }
  0x20   : > { %s456_s5 = sshll.u32 (!%p225_p11), %s231_s4, 4  ;;  %s457_s7 = sshll.u32 (!%p225_p11), %s231_s4, 5 }
  0x21   : > { %s233_s6 = scalar_lea.vmem (!%p225_p11), [#allocation2], %s456_s5  ;;  %s260_s12 = scalar_lea.vmem (!%p225_p11), [#allocation3], %s457_s7 }
  0x24   : > { %s262_s10 = scalar_select %p261_p12, %s577_s15, 1  ;;  %v269_v4 = vld [vmem:[%s719_s2] sm:$0xff]  ;;  %v290_v12 = vlaneseq  ;;  %v474_v15 = vld [vmem:[%s233_s6 + $0x8] sm:$0xff]  }
  0x25   : > { %s264_s21 = scalar_select %p263_p13, %s573_s14, 1  ;;  %v273_v5 = vrot.slane %v269_v4, 1  ;;  %v467_v14 = vld [vmem:[%s233_s6] sm:$0xff]   ;;  %v472_v19 = vunpack.c.l.bf16 %v474_v15  ;;  %v473_v20 = vunpack.c.h.bf16 %v474_v15 }
  0x26   : > { %s458_s11 = sshll.u32 %s262_s10, 1  ;;  %v291_v13 = vshrl.u32 %v290_v12, 7  ;;  %v468_v17 = vunpack.c.l.bf16 %v467_v14  ;;  %v469_v18 = vunpack.c.h.bf16 %v467_v14  ;;  %s462_s8 = sshll.u32 (%p659_p6), %s577_s15, 3 }
  0x27   : > { %s266_s25 = sadd.s32 %s458_s11, %s264_s21  ;;  %s310_s9 = sadd.s32 (%p659_p6), %s573_s14, %s462_s8 }
  0x28   : > { %s459_s26 = sshll.u32 %s266_s25, 3  ;;  %v292_v16 = vsub.s32 0, %v291_v13  ;;  %s463_s10 = sshll.u32 (%p659_p6), %s310_s9, 3 }
  0x29   : > { %s268_s30 = scalar_lea.vmem %s718_s1, %s459_s26  ;;  %s312_s22 = scalar_lea.vmem (%p659_p6), %s720_s3, %s463_s10 }
  0x2a   : > { %v270_v6 = vld [vmem:[%s268_s30] sm:$0xff] }
  0x2b   : > { %v271_v7 = vsub.f32 %v270_v6, %v269_v4 }
  0x2d   : > { %v275_v8 = vmul.f32 %v273_v5, %v271_v7 }
  0x2f   : > { %v460_v9 = vmul.f32 -1.442695, %v275_v8 }
  0x31   : > { %531 = vpow2.f32 %v460_v9 }
  0x3e   : > { %v532_v10 = vpop.eup %531 }
  0x3f   : > { %v279_v11 = vadd.f32 1.0, %v532_v10 }
  0x41   : > { %533 = vrcp.f32 %v279_v11 }
  0x4e   : > { %v534_v21 = vpop.eup %533 }
  0x4f   : > { %v293_v22 = vrot.slane %v534_v21, %v292_v16 }
  0x50   : > { %308 = sbr.rel (!%p659_p6) target bundleno = 93 (0x5d), region = 77 }
  0x51   : > { %v294_v23 = vmul.f32 %v468_v17, %v293_v22  ;;  %v295_v24 = vmul.f32 %v469_v18, %v293_v22  ;;  %v296_v25 = vmul.f32 %v472_v19, %v293_v22  ;;  %v297_v26 = vmul.f32 %v473_v20, %v293_v22 }
  0x53   : > { %298 = vst [vmem:[%s260_s12] sm:$0xff] %v294_v23  ;;  %299 = vst [vmem:[%s260_s12 + $0x8] sm:$0xff] %v295_v24 }
  0x54   : > { %300 = vst [vmem:[%s260_s12 + $0x10] sm:$0xff] %v296_v25  ;;  %301 = vst [vmem:[%s260_s12 + $0x18] sm:$0xff] %v297_v26 }
  0x5a   : > { %v347_v27 = vld [vmem:[%s260_s12] sm:$0xff]  ;;  %v349_v28 = vld [vmem:[%s260_s12 + $0x8] sm:$0xff] }
  0x5b   : > { %v351_v29 = vld [vmem:[%s260_s12 + $0x10] sm:$0xff]  ;;  %v353_v30 = vld [vmem:[%s260_s12 + $0x18] sm:$0xff]  ;;  %348 = vst [vmem:[%s312_s22] sm:$0xff] %v347_v27  ;;  %350 = vst [vmem:[%s312_s22 + $0x10] sm:$0xff] %v349_v28 }
  0x5c   : > { %352 = vst [vmem:[%s312_s22 + $0x20] sm:$0xff] %v351_v29  ;;  %354 = vst [vmem:[%s312_s22 + $0x30] sm:$0xff] %v353_v30 }
  0x5d PF: > { %s13_s18 = sadd.s32 1, %s589_s18   ;;  %s722_s12 = smov %s569_s13 }
  0x5e   : > { %p10_p0 = scmp.ge.s32.totalorder %s13_s18, 6   ;;  %s723_s13 = smov %s667_s27 }
  0x5f   : > { %s724_s14 = smov %s581_s16  ;;  %s725_s15 = smov %s585_s17 }
  0x60   : > { %s726_s16 = smov %s729_s19  ;;  %s727_s17 = smov %s733_s20 }
  0x61   :  { %12 = sbr.rel (!%p10_p0) target bundleno = 4 (0x4), region = 149 }

</bundles_post_ra>
